<compile_context>
chip_gen: v6e
topology: v6e:2x2x1
jax: 0.10.0
libtpu: 0.0.40
codegen_flags: <defaults>
</compile_context>

<pallas_src>
import jax
import jax.numpy as jnp
from jax.experimental import pallas as pl
from jax.experimental.pallas import tpu as pltpu


# --------------------------------------------------------------------------- #
# Kernel
# --------------------------------------------------------------------------- #
def _phase_select_kernel(x_ref, sel_ref, o_ref):
    """Select k (or k*k) pixel-unshuffle phases from a row slab via MXU matmuls.

    x_ref  : (1, th, Q)         Q = tw*k (one y phase, column window)  or
                                Q = k*W  (all y phases, full width)
    sel_ref: (P, Q, tw_out)     P = k (x phases) or k*k (y,x phases); 0/1 entries
    o_ref  : (1, P, th, tw_out) one output phase per p
    """
    rows = x_ref[0]                                    # (th, Q)
    for p in range(o_ref.shape[1]):                    # static unroll, P <= k*k
        picked = jnp.dot(
            rows, sel_ref[p],
            preferred_element_type=jnp.float32,
            # HIGHEST keeps f32 operands exact on the MXU (no bf16 truncation);
            # with a 0/1 selection matrix the result is bit-exact data movement.
            precision=jax.lax.Precision.HIGHEST,
        )
        o_ref[0, p] = picked.astype(o_ref.dtype)


# --------------------------------------------------------------------------- #
# Planning helpers
# --------------------------------------------------------------------------- #
def _vmem_capacity_bytes():
    try:
        return int(pltpu.get_tpu_info().vmem_capacity_bytes)
    except Exception:
        return 64 * 1024 * 1024            # v7x per-TC VMEM; conservative elsewhere


def _footprint_bytes(th, q, p, tw_out, itemsize):
    """Full per-step VMEM footprint: 2x input + 2x output + 2x sel + accumulator."""
    blk = th * q * itemsize                # input block (output block is same size)
    sel = p * q * tw_out * itemsize
    acc = th * tw_out * 4                  # f32 matmul result before the final cast
    return 2 * blk + 2 * blk + 2 * sel + 2 * acc


def _plan_tiles(h, w, k, itemsize, n_outer, budget):
    """Pick (th, tw, split_y, est_bytes)."""
    W = w * k
    sub = max(8, 32 // itemsize)           # sublane multiple (f32:8, bf16:16, 8-bit:32)

    # Row-tile candidates: divisors of h that are sublane multiples, plus h itself.
    th_cands = sorted({h} | {d for d in range(sub, h, sub) if h % d == 0},
                      reverse=True)
    # TODO(synk): h with no multiple-of-`sub` divisor falls back to th == h (no
    # remainder-tile masking); fine for the even image sizes LTE uses.

    # Column-tile candidates (lane-aligned fast path): multiples of 128 dividing w,
    # or w itself when the input window (w*k) is already lane-aligned.
    tw_cands = sorted({t for t in range(128, w + 1, 128) if w % t == 0}
                      | ({w} if W % 128 == 0 else set()))

    def pick_th(q, p, tw_out, steps_of):
        fits = [t for t in th_cands
                if _footprint_bytes(t, q, p, tw_out, itemsize) <= budget]
        if not fits:
            return th_cands[-1]            # correctness first for pathological shapes
        th = fits[0]
        for t in fits:                     # shrink (never below 128) until >= 4 steps
            th = t
            if steps_of(t) >= 4 or t <= 128:
                break
        return th

    if tw_cands:
        # Smallest lane-aligned tile keeps the MXU contraction (2*k*tw flops/elem)
        # well under the HBM roofline; th is the block-size / overhead knob.
        tw = tw_cands[0]
        th = pick_th(tw * k, k, tw,
                     lambda t: n_outer * (h // t) * k * (w // tw))
        return th, tw, True, _footprint_bytes(th, tw * k, k, tw, itemsize)

    # Fallback (small or ragged w): take the whole (k*W)-wide minor extent and
    # peel all k*k phases per step.
    # TODO(synk): output stores are lane-masked here when w < 128; a flattened
    # (h*w) output view would fix that at the cost of an in-kernel relayout.
    th = pick_th(k * W, k * k, w, lambda t: n_outer * (h // t))
    return th, None, False, _footprint_bytes(th, k * W, k * k, w, itemsize)


# --------------------------------------------------------------------------- #
# Wrapper
# --------------------------------------------------------------------------- #
def _pixel_unshuffle_ref(x, k):
    """Pure-JAX reference (same channel ordering as the grouped-conv spec)."""
    B, C, H, W = x.shape
    h, w = H // k, W // k
    y = x.reshape(B, C, h, k, w, k)
    y = jnp.transpose(y, (0, 1, 3, 5, 2, 4))            # (B, C, ky, kx, h, w)
    return y.reshape(B, C * k * k, h, w)


def pixel_unshuffle(x, downscale_factor):
    k = int(downscale_factor)
    B, C, H, W = x.shape
    assert H % k == 0 and W % k == 0, "spatial dims must be divisible by k"
    if k == 1:
        return x
    h, w = H // k, W // k

    if not jnp.issubdtype(x.dtype, jnp.floating):
        # TODO(synk): integer dtypes need a non-MXU selection path; use plain XLA.
        return _pixel_unshuffle_ref(x, k)

    itemsize = jnp.dtype(x.dtype).itemsize
    vmem_cap = _vmem_capacity_bytes()
    th, tw, split_y, est = _plan_tiles(h, w, k, itemsize, B * C,
                                       budget=int(0.6 * vmem_cap))
    vmem_limit = int(min(0.85 * vmem_cap,
                         max(0.75 * vmem_cap, est + (8 << 20))))

    # Free reshape: (B, C, h*k, W) -> (B*C, h, k*W); minor index = y*W + col.
    x3 = x.reshape(B * C, h, k * W)

    if split_y:
        n_h, n_w = h // th, w // tw
        # sel[x, r, j] = 1  iff  r == j*k + x        (column-phase selection)
        r = jnp.arange(tw * k)[None, :, None]
        j = jnp.arange(tw)[None, None, :]
        xs = jnp.arange(k)[:, None, None]
        sel = (r == j * k + xs).astype(x.dtype)

        grid = (B * C, n_h, k, n_w)
        in_specs = [
            # (th) rows of output-row band ht, phase yp, column window wt:
            # merged-minor block index = yp*n_w + wt  ->  start = yp*W + wt*tw*k.
            pl.BlockSpec((1, th, tw * k),
                         lambda bc, ht, yp, wt: (bc, ht, yp * n_w + wt)),
            # Selection matrices stay resident (constant block index).
            pl.BlockSpec((k, tw * k, tw), lambda bc, ht, yp, wt: (0, 0, 0)),
        ]
        out_specs = pl.BlockSpec((1, k, th, tw),
                                 lambda bc, ht, yp, wt: (bc, yp, ht, wt))
        semantics = ("parallel",) * 4
    else:
        n_h = h // th
        # sel[y*k + x, r, j] = 1  iff  r == y*W + j*k + x   (both phases at once)
        p = jnp.arange(k * k)
        ys = (p // k)[:, None, None]
        xs = (p % k)[:, None, None]
        r = jnp.arange(k * W)[None, :, None]
        j = jnp.arange(w)[None, None, :]
        sel = (r == ys * W + j * k + xs).astype(x.dtype)

        grid = (B * C, n_h)
        in_specs = [
            pl.BlockSpec((1, th, k * W), lambda bc, ht: (bc, ht, 0)),
            pl.BlockSpec((k * k, k * W, w), lambda bc, ht: (0, 0, 0)),
        ]
        out_specs = pl.BlockSpec((1, k * k, th, w), lambda bc, ht: (bc, 0, ht, 0))
        semantics = ("parallel",) * 2

    out = pl.pallas_call(
        _phase_select_kernel,
        out_shape=jax.ShapeDtypeStruct((B * C, k * k, h, w), x.dtype),
        grid=grid,
        in_specs=in_specs,
        out_specs=out_specs,
        compiler_params=pltpu.CompilerParams(
            dimension_semantics=semantics,
            vmem_limit_bytes=vmem_limit),
        cost_estimate=pl.CostEstimate(
            flops=0, transcendentals=0,
            bytes_accessed=2 * B * C * H * W * itemsize),
    )(x3, sel)

    # (B*C, k*k, h, w) -> (B, C*k*k, h, w): adjacent-dim split/merge, free.
    return out.reshape(B, C * k * k, h, w)


class PixelUnshuffle:
    """Mirror of the PyTorch nn.Module."""

    def __init__(self, downscale_factor):
        self.downscale_factor = downscale_factor

    def __call__(self, x):
        return pixel_unshuffle(x, self.downscale_factor)


# --------------------------------------------------------------------------- #
# Self-test
# --------------------------------------------------------------------------- #
if __name__ == "__main__":
    key = jax.random.PRNGKey(0)
    k1, k2, k3 = jax.random.split(key, 3)

    # Main check: batch=2, channels=4, spatial=16, downscale factor 2.
    x = jax.random.normal(k1, (2, 4, 16, 16), jnp.float32)
    y = PixelUnshuffle(2)(x)
    jax.block_until_ready(y)
    assert y.shape == (2, 16, 8, 8), y.shape
    assert jnp.array_equal(y, _pixel_unshuffle_ref(x, 2)), "mismatch (k=2)"

    # Different downscale factor.
    x4 = jax.random.normal(k2, (1, 2, 32, 32), jnp.float32)
    y4 = pixel_unshuffle(x4, 4)
    jax.block_until_ready(y4)
    assert y4.shape == (1, 32, 8, 8), y4.shape
    assert jnp.array_equal(y4, _pixel_unshuffle_ref(x4, 4)), "mismatch (k=4)"

    # Wide enough to exercise the lane-aligned (W-tiled, y-in-grid) fast path.
    xw = jax.random.normal(k3, (1, 1, 256, 256), jnp.float32)
    yw = pixel_unshuffle(xw, 2)
    jax.block_until_ready(yw)
    assert yw.shape == (1, 4, 128, 128), yw.shape
    assert jnp.array_equal(yw, _pixel_unshuffle_ref(xw, 2)), "mismatch (wide)"

    print("KERNEL_OK")
</pallas_src>

<mosaic_0001>
module attributes {stable_mosaic.version = 11 : i64} {
  func.func @_phase_select_kernel(%arg0: i32, %arg1: i32, %arg2: memref<1x8x32xf32, #tpu.memory_space<vmem>>, %arg3: memref<4x32x8xf32, #tpu.memory_space<vmem>>, %arg4: memref<1x4x8x8xf32, #tpu.memory_space<vmem>>) attributes {dimension_semantics = [#tpu.dimension_semantics<parallel>, #tpu.dimension_semantics<parallel>], iteration_bounds = array<i64: 8, 1>, scalar_prefetch = 0 : i64, scratch_operands = 0 : i64, tpu.core_type = #tpu.core_type<tc>, window_params = [{transform_indices = @transform_0, window_bounds = array<i64: 1, 8, 32>}, {pipeline_mode = #tpu.pipeline_mode<synchronous>, transform_indices = @transform_1, window_bounds = array<i64: 4, 32, 8>}, {transform_indices = @transform_2, window_bounds = array<i64: 1, 4, 8, 8>}]} {
    %c0 = arith.constant 0 : index
    %c0_0 = arith.constant 0 : index
    %c0_1 = arith.constant 0 : index
    %0 = vector.load %arg2[%c0, %c0_0, %c0_1] : memref<1x8x32xf32, #tpu.memory_space<vmem>>, vector<1x8x32xf32>
    %1 = vector.shape_cast %0 : vector<1x8x32xf32> to vector<8x32xf32>
    %c0_2 = arith.constant 0 : index
    %c0_3 = arith.constant 0 : index
    %c0_4 = arith.constant 0 : index
    %2 = vector.load %arg3[%c0_2, %c0_3, %c0_4] : memref<4x32x8xf32, #tpu.memory_space<vmem>>, vector<1x32x8xf32>
    %3 = vector.shape_cast %2 : vector<1x32x8xf32> to vector<32x8xf32>
    %cst = arith.constant dense<0.000000e+00> : vector<8x8xf32>
    %4 = tpu.matmul %1, %3, %cst {dimension_numbers = #tpu.dot_dimension_numbers<[1], [0], [0], [1], [0, 0, 1, 1], [], []>, precision = #tpu.contract_precision<fp32>} : vector<8x32xf32>, vector<32x8xf32>, vector<8x8xf32> -> vector<8x8xf32>
    %c0_5 = arith.constant 0 : index
    %c0_6 = arith.constant 0 : index
    %c0_7 = arith.constant 0 : index
    %c0_8 = arith.constant 0 : index
    %5 = vector.load %arg4[%c0_5, %c0_6, %c0_7, %c0_8] : memref<1x4x8x8xf32, #tpu.memory_space<vmem>>, vector<1x1x8x8xf32>
    %6 = vector.shape_cast %5 : vector<1x1x8x8xf32> to vector<8x8xf32>
    %7 = vector.shape_cast %4 : vector<8x8xf32> to vector<1x1x8x8xf32>
    tpu.vector_store %arg4[%c0_5, %c0_6, %c0_7, %c0_8], %7 {strides = array<i32>} : memref<1x4x8x8xf32, #tpu.memory_space<vmem>>, vector<1x1x8x8xf32>,
    %c1 = arith.constant 1 : index
    %c0_9 = arith.constant 0 : index
    %c0_10 = arith.constant 0 : index
    %8 = vector.load %arg3[%c1, %c0_9, %c0_10] : memref<4x32x8xf32, #tpu.memory_space<vmem>>, vector<1x32x8xf32>
    %9 = vector.shape_cast %8 : vector<1x32x8xf32> to vector<32x8xf32>
    %cst_11 = arith.constant dense<0.000000e+00> : vector<8x8xf32>
    %10 = tpu.matmul %1, %9, %cst_11 {dimension_numbers = #tpu.dot_dimension_numbers<[1], [0], [0], [1], [0, 0, 1, 1], [], []>, precision = #tpu.contract_precision<fp32>} : vector<8x32xf32>, vector<32x8xf32>, vector<8x8xf32> -> vector<8x8xf32>
    %c0_12 = arith.constant 0 : index
    %c1_13 = arith.constant 1 : index
    %c0_14 = arith.constant 0 : index
    %c0_15 = arith.constant 0 : index
    %11 = vector.load %arg4[%c0_12, %c1_13, %c0_14, %c0_15] : memref<1x4x8x8xf32, #tpu.memory_space<vmem>>, vector<1x1x8x8xf32>
    %12 = vector.shape_cast %11 : vector<1x1x8x8xf32> to vector<8x8xf32>
    %13 = vector.shape_cast %10 : vector<8x8xf32> to vector<1x1x8x8xf32>
    tpu.vector_store %arg4[%c0_12, %c1_13, %c0_14, %c0_15], %13 {strides = array<i32>} : memref<1x4x8x8xf32, #tpu.memory_space<vmem>>, vector<1x1x8x8xf32>,
    %c2 = arith.constant 2 : index
    %c0_16 = arith.constant 0 : index
    %c0_17 = arith.constant 0 : index
    %14 = vector.load %arg3[%c2, %c0_16, %c0_17] : memref<4x32x8xf32, #tpu.memory_space<vmem>>, vector<1x32x8xf32>
    %15 = vector.shape_cast %14 : vector<1x32x8xf32> to vector<32x8xf32>
    %cst_18 = arith.constant dense<0.000000e+00> : vector<8x8xf32>
    %16 = tpu.matmul %1, %15, %cst_18 {dimension_numbers = #tpu.dot_dimension_numbers<[1], [0], [0], [1], [0, 0, 1, 1], [], []>, precision = #tpu.contract_precision<fp32>} : vector<8x32xf32>, vector<32x8xf32>, vector<8x8xf32> -> vector<8x8xf32>
    %c0_19 = arith.constant 0 : index
    %c2_20 = arith.constant 2 : index
    %c0_21 = arith.constant 0 : index
    %c0_22 = arith.constant 0 : index
    %17 = vector.load %arg4[%c0_19, %c2_20, %c0_21, %c0_22] : memref<1x4x8x8xf32, #tpu.memory_space<vmem>>, vector<1x1x8x8xf32>
    %18 = vector.shape_cast %17 : vector<1x1x8x8xf32> to vector<8x8xf32>
    %19 = vector.shape_cast %16 : vector<8x8xf32> to vector<1x1x8x8xf32>
    tpu.vector_store %arg4[%c0_19, %c2_20, %c0_21, %c0_22], %19 {strides = array<i32>} : memref<1x4x8x8xf32, #tpu.memory_space<vmem>>, vector<1x1x8x8xf32>,
    %c3 = arith.constant 3 : index
    %c0_23 = arith.constant 0 : index
    %c0_24 = arith.constant 0 : index
    %20 = vector.load %arg3[%c3, %c0_23, %c0_24] : memref<4x32x8xf32, #tpu.memory_space<vmem>>, vector<1x32x8xf32>
    %21 = vector.shape_cast %20 : vector<1x32x8xf32> to vector<32x8xf32>
    %cst_25 = arith.constant dense<0.000000e+00> : vector<8x8xf32>
    %22 = tpu.matmul %1, %21, %cst_25 {dimension_numbers = #tpu.dot_dimension_numbers<[1], [0], [0], [1], [0, 0, 1, 1], [], []>, precision = #tpu.contract_precision<fp32>} : vector<8x32xf32>, vector<32x8xf32>, vector<8x8xf32> -> vector<8x8xf32>
    %c0_26 = arith.constant 0 : index
    %c3_27 = arith.constant 3 : index
    %c0_28 = arith.constant 0 : index
    %c0_29 = arith.constant 0 : index
    %23 = vector.load %arg4[%c0_26, %c3_27, %c0_28, %c0_29] : memref<1x4x8x8xf32, #tpu.memory_space<vmem>>, vector<1x1x8x8xf32>
    %24 = vector.shape_cast %23 : vector<1x1x8x8xf32> to vector<8x8xf32>
    %25 = vector.shape_cast %22 : vector<8x8xf32> to vector<1x1x8x8xf32>
    tpu.vector_store %arg4[%c0_26, %c3_27, %c0_28, %c0_29], %25 {strides = array<i32>} : memref<1x4x8x8xf32, #tpu.memory_space<vmem>>, vector<1x1x8x8xf32>,
    return
  }
  func.func @transform_0(%arg0: i32, %arg1: i32) -> (i32, i32, i32) {
    %c0_i32 = arith.constant 0 : i32
    %c0_i32_0 = arith.constant 0 : i32
    return %arg0, %arg1, %c0_i32 : i32, i32, i32
  }
  func.func @transform_1(%arg0: i32, %arg1: i32) -> (i32, i32, i32) {
    %c0_i32 = arith.constant 0 : i32
    %c0_i32_0 = arith.constant 0 : i32
    %c0_i32_1 = arith.constant 0 : i32
    %c0_i32_2 = arith.constant 0 : i32
    return %c0_i32, %c0_i32_0, %c0_i32_1 : i32, i32, i32
  }
  func.func @transform_2(%arg0: i32, %arg1: i32) -> (i32, i32, i32, i32) {
    %c0_i32 = arith.constant 0 : i32
    %c0_i32_0 = arith.constant 0 : i32
    %c0_i32_1 = arith.constant 0 : i32
    return %arg0, %c0_i32, %arg1, %c0_i32_0 : i32, i32, i32, i32
  }
}

</mosaic_0001>

<bundles_post_ra>
// kernel: tpu_custom_call.1
= control target key start
LH: loop header
LB: loop body
LE: loop exit
PB: predicated region body
PF: predicated region fallthrough
CT: control target
= control target key end

     0   :  { %7 = vsyncpa [#allocation3], 0  ;;  %s3392_s0 = inlined_call_operand.vmem [shape: f32[8,8,32], index: 0, kind: input, shape index: {}]   ;;  %s3393_s1 = inlined_call_operand.vmem [shape: f32[4,32,8], index: 1, kind: input, shape index: {}]   ;;  %s3394_s2 = inlined_call_operand.hbm [shape: f32[8,4,8,8], index: 2, kind: output, shape index: {}]  }
   0x1   :  { %9 = vsyncpa [#allocation3 + $0x1], 0  ;;  %s2795_s9 = smov 0   ;;  %s2797_s10 = smov 0  }
   0x2   :  { %s2799_s11 = smov 0   ;;  %s2801_s12 = smov 0  }
   0x3   :  { %s2803_s13 = smov 0   ;;  %s2805_s14 = smov 0  }
   0x4 LB: > { %s2226_s15 = sadd.s32 4294967295, %s2773_s14   ;;  %s2227_s16 = sadd.s32 4294967294, %s2773_s14   ;;  %s2773_s14 = sphi %s2805_s14, %s15_s14   ;;  %s2769_s13 = sphi %s2803_s13, %s3401_s13   ;;  %s2765_s12 = sphi %s2801_s12, %s3400_s12   ;;  %s2761_s11 = sphi %s2799_s11, %s3399_s11   ;;  %s2757_s10 = sphi %s2797_s10, %s3398_s10   ;;  %s2753_s9 = sphi %s2795_s9, %s3397_s9  }
   0x5   : > { %s27_s17 = sadd.s32 1, %s2769_s13  ;;  %s85_s18 = sadd.s32 1, %s2761_s11 }
   0x6   : > { %p29_p0 = scmp.ge.s32.totalorder %s27_s17, 8  ;;  %p95_p1 = scmp.ne.s32.totalorder %s2761_s11, %s2757_s10 }
   0x7   : > { %p96_p2 = scmp.eq.s32.totalorder %s2226_s15, 7  ;;  %p101_p3 = scmp.ne.s32.totalorder %s2757_s10, %s2753_s9 }
   0x8   : > { %s3403_s17 = smov (%p29_p0, %s27_s17), 0  ;;  %p102_p5 = scmp.eq.s32.totalorder %s2227_s16, 7 }
   0x9   : > { %p2835_p4 = por %p96_p2, %p95_p1  ;;  %s80_s20 = ssub.s32 %s2769_s13, %s3403_s17 }
   0xa   : > { %p2230_p6 = scmp.ge.s32.totalorder %s2773_s14, 1  ;;  %p83_p7 = scmp.eq.s32.totalorder %s80_s20, 0 }
   0xb   : > { %p2842_p8 = por %p102_p5, %p101_p3  ;;  %p133_p9 = scmp.lt.s32.totalorder %s2773_s14, 9 }
   0xc   : > { %s2848_s22 = scalar_select %p83_p7, %s2761_s11, %s85_s18  }
   0xd   : > { %p134_p10 = pnand %p2230_p6, %p133_p9 }
   0xe   : > { %p157_p11 = scmp.lt.s32.totalorder (!%p134_p10), %s2765_s12, 7  ;;  %s154_s24 = sand.u32 (!%p134_p10), 1, %s2757_s10  }
   0xf   : > { %137 = sbr.rel (%p134_p10) target bundleno = 356 (0x164), region = 28  ;;  %s2231_s25 = sshll.u32 (!%p134_p10), %s154_s24, 5 }
  0x10   : > { %s3326_s26 = scalar_lea.vmem (!%p134_p10), [#allocation2], %s2231_s25  ;;  %s2253_s28 = sshll.u32 (!%p134_p10), %s2765_s12, 9 }
  0x11   : > { %s2151_s27 = sshll.u32 (!%p134_p10), %s3326_s26, 4  ;;  %s2777_s5 = smov (!%p134_p10), [#allocation2]   ;;  %s3336_s27 = int_to_ptr.vmem [resolvable:$true] %s2151_s27 }
  0x12   : > { %s2701_s6 = sshll.u32 (!%p134_p10), %s2777_s5, 4  ;;  %s2702_s6 = int_to_ptr.vmem [resolvable:$false] %s2701_s6 }
  0x13   : > { %p2704_p1 = scmp.lt.s32.totalorder (!%p134_p10), %s3336_s27, %s2702_s6 }
  0x14   : > { %v168_v0 = vld [vmem:[%s3393_s1 + $0x18] sm:$0xff]  ;;  %v167_v1 = vld [vmem:[%s3393_s1 + $0x10] sm:$0xff]  ;;  %v166_v2 = vld [vmem:[%s3393_s1 + $0x8] sm:$0xff]  ;;  %v2775_v3 = vmov 0.0   ;;  %vm2776_vm0 = vmmov 0   ;;  %s158_s3 = scalar_select %p157_p11, %s2765_s12, 7 }
  0x15   : > { %2374 = vmatprep.subr.mxu0 %v2775_v3  ;;  %v2861_v4 = vand.u32 4294901760, %v168_v0  ;;  %2385 = vmatprep.subr.mxu1 %v2775_v3  ;;  %v2864_v5 = vand.u32 4294901760, %v167_v1  ;;  %v2866_v6 = vand.u32 4294901760, %v166_v2  ;;  %v165_v7 = vld [vmem:[%s3393_s1] sm:$0xff]  ;;  %vm169_vm1 = vcmask 261120   ;;  %v2236_v32 = vld [vmem:[%s3393_s1 + $0x38] sm:$0xff] }
  0x16   : > { %v2871_v8 = vand.u32 4294901760, %v165_v7  ;;  %2382 = vmatprep.mubr.msk.f32.mxu0 %vm2776_vm0, %v2775_v3  ;;  %2393 = vmatprep.mubr.msk.f32.mxu1 %vm2776_vm0, %v2775_v3  ;;  %s2232_s4 = sshll.u32 %s158_s3, 3  ;;  %v2235_v33 = vld [vmem:[%s3393_s1 + $0x30] sm:$0xff]  ;;  %v2944_v34 = vand.u32 4294901760, %v2236_v32  ;;  %v2234_v35 = vld [vmem:[%s3393_s1 + $0x28] sm:$0xff]  ;;  %v2233_v39 = vld [vmem:[%s3393_s1 + $0x20] sm:$0xff]  ;;  %s3341_s3 = scalar_lea.hbm %s3394_s2, %s2253_s28 }
  0x17   : > { %2375 = vmatpush3.msra.mxu0 %v2861_v4  ;;  %v2880_v9 = vsub.f32 %v168_v0, %v2861_v4  ;;  %v2883_v10 = vsub.f32 %v167_v1, %v2864_v5  ;;  %v2886_v11 = vsub.f32 %v166_v2, %v2866_v6  ;;  %s163_s7 = scalar_lea.vmem %s3392_s0, %s2232_s4  ;;  %v2953_v36 = vand.u32 4294901760, %v2235_v33  ;;  %v2241_v56 = vld [vmem:[%s3393_s1 + $0x58] sm:$0xff]  ;;  %v2240_v57 = vld [vmem:[%s3393_s1 + $0x50] sm:$0xff]  ;;  %v2239_v59 = vld [vmem:[%s3393_s1 + $0x48] sm:$0xff]  ;;  %s3347_s4 = scalar_lea.sflag [#allocation3], %s154_s24 }
  0x18   : > { %2376 = vmatprep.subr.mxu0 %v2775_v3  ;;  %v2890_v12 = vsub.f32 %v165_v7, %v2871_v8  ;;  %v164_v17 = vld [vmem:[%s163_s7] sm:$0xff]  ;;  %v2960_v37 = vsub.f32 %v2236_v32, %v2944_v34  ;;  %v2962_v38 = vand.u32 4294901760, %v2234_v35  ;;  %v2978_v41 = vand.u32 4294901760, %v2233_v39  ;;  %s2697_s12 = scalar_lea.vmem %s3336_s27, 512  ;;  %s2703_s7 = scalar_lea.vmem %s2702_s6, 1024 }
  0x19   : > { %v279_v13 = vand.u32 4294901760, %v2880_v9  ;;  %2377 = vmatpush3.msra.mxu0 %v2864_v5  ;;  %v286_v14 = vand.u32 4294901760, %v2883_v10  ;;  %v293_v15 = vand.u32 4294901760, %v2886_v11  ;;  %v171_v21 = vsel %vm169_vm1, %v164_v17, 0  ;;  %v2238_v63 = vld [vmem:[%s3393_s1 + $0x40] sm:$0xff]  ;;  %v2246_v17 = vld [vmem:[%s3393_s1 + $0x78] sm:$0xff]  ;;  %p2698_p12 = scmp.ne.s32.totalorder %s3336_s27, %s2697_s12  ;;  %p2705_p2 = scmp.lt.s32.totalorder %s2703_s7, %s2697_s12 }
  0x1a   : > { %2378 = vmatprep.subr.mxu0 %v2775_v3  ;;  %v300_v16 = vand.u32 4294901760, %v2890_v12  ;;  %v2912_v22 = vand.u32 4294901760, %v171_v21  ;;  %v2973_v40 = vsub.f32 %v2235_v33, %v2953_v36  ;;  %v771_v42 = vand.u32 4294901760, %v2960_v37 }
  0x1b   : > { %v280_v18 = vsub.f32 %v2880_v9, %v279_v13  ;;  %v287_v19 = vsub.f32 %v2883_v10, %v286_v14  ;;  %2379 = vmatpush3.msra.mxu0 %v2866_v6  ;;  %v294_v20 = vsub.f32 %v2886_v11, %v293_v15  ;;  %v2984_v43 = vsub.f32 %v2234_v35, %v2962_v38  ;;  %p2699_p13 = pnand %p2698_p12, %p2835_p4  ;;  %p2706_p3 = por %p2705_p2, %p2704_p1 }
  0x1c   : > { %2380 = vmatprep.subr.mxu0 %v2775_v3  ;;  %v301_v25 = vsub.f32 %v2890_v12, %v300_v16  ;;  %v2920_v26 = vsub.f32 %v171_v21, %v2912_v22  ;;  %v778_v44 = vand.u32 4294901760, %v2973_v40  ;;  %v2996_v45 = vsub.f32 %v2233_v39, %v2978_v41 }
  0x1d   : > { %v281_v23 = vand.u32 4294901760, %v280_v18  ;;  %v288_v24 = vand.u32 4294901760, %v287_v19  ;;  %2381 = vmatpush3.msra.mxu0 %v2871_v8  ;;  %v295_v27 = vand.u32 4294901760, %v294_v20  ;;  %v772_v46 = vsub.f32 %v2960_v37, %v771_v42  ;;  %v2245_v18 = vld [vmem:[%s3393_s1 + $0x70] sm:$0xff]  ;;  %v2244_v20 = vld [vmem:[%s3393_s1 + $0x68] sm:$0xff]  ;;  %p2700_p0 = pneg %p2699_p13 }
  0x1e   : > { %2396 = vmatprep.subr.mxu0 %v2775_v3  ;;  %v2924_v28 = vand.u32 4294901760, %v2920_v26  ;;  %v302_v29 = vand.u32 4294901760, %v301_v25  ;;  %v785_v47 = vand.u32 4294901760, %v2984_v43  ;;  %v779_v48 = vsub.f32 %v2973_v40, %v778_v44  ;;  %v2243_v25 = vld [vmem:[%s3393_s1 + $0x60] sm:$0xff] }
  0x1f   : > { %2386 = vmatpush3.msra.mxu1 %v281_v23  ;;  %v792_v49 = vand.u32 4294901760, %v2996_v45  ;;  %v773_v50 = vand.u32 4294901760, %v772_v46  ;;  %v3058_v58 = vand.u32 4294901760, %v2241_v56  ;;  %v3067_v60 = vand.u32 4294901760, %v2240_v57  ;;  %p2707_p5 = pnand %p2706_p3, %p2700_p0 }
  0x20   : > { %2387 = vmatprep.subr.mxu1 %v2775_v3  ;;  %v245_v30 = vsub.f32 %v2920_v26, %v2924_v28  ;;  %v786_v51 = vsub.f32 %v2984_v43, %v785_v47  ;;  %v780_v52 = vand.u32 4294901760, %v779_v48  ;;  %v3076_v62 = vand.u32 4294901760, %v2239_v59 }
  0x21   : > { %2388 = vmatpush3.msra.mxu1 %v288_v24  ;;  %v793_v53 = vsub.f32 %v2996_v45, %v792_v49  ;;  %v3074_v61 = vsub.f32 %v2241_v56, %v3058_v58  ;;  %v3087_v0 = vsub.f32 %v2240_v57, %v3067_v60  ;;  %v3092_v1 = vand.u32 4294901760, %v2238_v63 }
  0x22   : > { %2389 = vmatprep.subr.mxu1 %v2775_v3  ;;  %v2930_v31 = vand.u32 4294901760, %v245_v30  ;;  %v787_v54 = vand.u32 4294901760, %v786_v51  ;;  %v3172_v19 = vand.u32 4294901760, %v2246_v17  ;;  %v3181_v21 = vand.u32 4294901760, %v2245_v18 }
  0x23   : > { %2390 = vmatpush3.msra.mxu1 %v295_v27  ;;  %v794_v55 = vand.u32 4294901760, %v793_v53  ;;  %v1263_v2 = vand.u32 4294901760, %v3074_v61  ;;  %v3190_v24 = vand.u32 4294901760, %v2244_v20  ;;  %vm658_vm2 = vcmask 64512  }
  0x24   : > { %2391 = vmatprep.subr.mxu1 %v2775_v3  ;;  %2383 = vmatmul.mubr.f32.vlgmr.msra.gmra.mxu0 %v2930_v31  ;;  %v3188_v23 = vsub.f32 %v2246_v17, %v3172_v19  ;;  %v3201_v27 = vsub.f32 %v2245_v18, %v3181_v21 }
  0x25   : > { %2392 = vmatpush3.msra.mxu1 %v302_v29  ;;  %2397 = vmatpush3.msra.mxu0 %v2880_v9  ;;  %v1264_v7 = vsub.f32 %v3074_v61, %v1263_v2  ;;  %v3206_v29 = vand.u32 4294901760, %v2243_v25  ;;  %v3212_v32 = vsub.f32 %v2244_v20, %v3190_v24 }
  0x26   : > { %2394 = vmatmul.mubr.f32.vlgmr.msra.gmra.mxu1 %v2912_v22  ;;  %2407 = vmatprep.subr.mxu1 %v2775_v3  ;;  %v1755_v30 = vand.u32 4294901760, %v3188_v23  ;;  %v1762_v33 = vand.u32 4294901760, %v3201_v27 }
  0x27   : > { %2398 = vmatprep.subr.mxu0 %v2775_v3  ;;  %2408 = vmatpush3.msra.mxu1 %v2861_v4 }
  0x28   : > { %2399 = vmatpush3.msra.mxu0 %v2883_v10  ;;  %2409 = vmatprep.subr.mxu1 %v2775_v3  ;;  %v1756_v35 = vsub.f32 %v3188_v23, %v1755_v30 }
  0x29   : > { %2400 = vmatprep.subr.mxu0 %v2775_v3  ;;  %2410 = vmatpush3.msra.mxu1 %v2864_v5 }
  0x2a   : > { %2401 = vmatpush3.msra.mxu0 %v2886_v11  ;;  %2411 = vmatprep.subr.mxu1 %v2775_v3  ;;  %v1265_v11 = vand.u32 4294901760, %v1264_v7  ;;  %v1757_v39 = vand.u32 4294901760, %v1756_v35 }
  0x2b   : > { %2402 = vmatprep.subr.mxu0 %v2775_v3  ;;  %2412 = vmatpush3.msra.mxu1 %v2866_v6 }
  0x2c   : > { %2403 = vmatpush3.msra.mxu0 %v2890_v12  ;;  %2404 = vmatprep.mubr.msk.f32.mxu0 %vm2776_vm0, %v2775_v3 }
  0x2d   : > { %2413 = vmatprep.subr.mxu1 %v2775_v3  ;;  %2405 = vmatmul.mubr.f32.vlgmr.msra.gmra.mxu0 %v2920_v26 }
  0x2e   : > { %2414 = vmatpush3.msra.mxu1 %v2871_v8  ;;  %2415 = vmatprep.mubr.msk.f32.mxu1 %vm2776_vm0, %v2775_v3 }
  0x2f   : > { %2418 = vmatprep.subr.mxu0 %v2775_v3  ;;  %2416 = vmatmul.mubr.f32.vlgmr.msra.gmra.mxu1 %v2924_v28 }
  0x30   : > { %2419 = vmatpush3.msra.mxu0 %v279_v13  ;;  %2429 = vmatprep.subr.mxu1 %v2775_v3 }
  0x31   : > { %2420 = vmatprep.subr.mxu0 %v2775_v3  ;;  %2430 = vmatpush3.msra.mxu1 %v2861_v4  ;;  %v3098_v4 = vsub.f32 %v2239_v59, %v3076_v62 }
  0x32   : > { %2421 = vmatpush3.msra.mxu0 %v286_v14  ;;  %2431 = vmatprep.subr.mxu1 %v2775_v3 }
  0x33   : > { %2422 = vmatprep.subr.mxu0 %v2775_v3  ;;  %2432 = vmatpush3.msra.mxu1 %v2864_v5  ;;  %v1270_v5 = vand.u32 4294901760, %v3087_v0 }
  0x34   : > { %2423 = vmatpush3.msra.mxu0 %v293_v15  ;;  %2433 = vmatprep.subr.mxu1 %v2775_v3 }
  0x35   : > { %2424 = vmatprep.subr.mxu0 %v2775_v3  ;;  %2434 = vmatpush3.msra.mxu1 %v2866_v6  ;;  %v3110_v6 = vsub.f32 %v2238_v63, %v3092_v1  ;;  %v1271_v9 = vsub.f32 %v3087_v0, %v1270_v5 }
  0x36   : > { %2425 = vmatpush3.msra.mxu0 %v300_v16  ;;  %2426 = vmatprep.mubr.msk.f32.mxu0 %vm2776_vm0, %v2775_v3 }
  0x37   : > { %2435 = vmatprep.subr.mxu1 %v2775_v3  ;;  %2427 = vmatmul.mubr.f32.vlgmr.msra.gmra.mxu0 %v2912_v22  ;;  %v1284_v10 = vand.u32 4294901760, %v3110_v6  ;;  %v1272_v13 = vand.u32 4294901760, %v1271_v9 }
  0x38   : > { %2436 = vmatpush3.msra.mxu1 %v2871_v8  ;;  %2437 = vmatprep.mubr.msk.f32.mxu1 %vm2776_vm0, %v2775_v3  ;;  %v1277_v8 = vand.u32 4294901760, %v3098_v4 }
  0x39   : > { %2440 = vmatprep.subr.mxu0 %v2775_v3  ;;  %2438 = vmatmul.mubr.f32.vlgmr.msra.gmra.mxu1 %v2912_v22  ;;  %v1285_v14 = vsub.f32 %v3110_v6, %v1284_v10 }
  0x3a   : > { %2441 = vmatpush3.msra.mxu0 %v2944_v34  ;;  %2451 = vmatprep.subr.mxu1 %v2775_v3  ;;  %v1278_v12 = vsub.f32 %v3098_v4, %v1277_v8 }
  0x3b   : > { %2442 = vmatprep.subr.mxu0 %v2775_v3  ;;  %2452 = vmatpush3.msra.mxu1 %v773_v50  ;;  %v1286_v16 = vand.u32 4294901760, %v1285_v14 }
  0x3c   : > { %2443 = vmatpush3.msra.mxu0 %v2953_v36  ;;  %2453 = vmatprep.subr.mxu1 %v2775_v3  ;;  %v1279_v15 = vand.u32 4294901760, %v1278_v12 }
  0x3d   : > { %2444 = vmatprep.subr.mxu0 %v2775_v3  ;;  %2454 = vmatpush3.msra.mxu1 %v780_v52 }
  0x3e   : > { %2445 = vmatpush3.msra.mxu0 %v2962_v38  ;;  %2455 = vmatprep.subr.mxu1 %v2775_v3 }
  0x3f   : > { %2446 = vmatprep.subr.mxu0 %v2775_v3  ;;  %2456 = vmatpush3.msra.mxu1 %v787_v54 }
  0x40   : > { %2447 = vmatpush3.msra.mxu0 %v2978_v41  ;;  %2448 = vmatprep.mubr.msk.f32.mxu0 %vm2776_vm0, %v2775_v3 }
  0x41   : > { %2457 = vmatprep.subr.mxu1 %v2775_v3  ;;  %2449 = vmatmul.mubr.f32.vlgmr.msra.gmra.mxu0 %v2930_v31 }
  0x42   : > { %2458 = vmatpush3.msra.mxu1 %v794_v55  ;;  %2459 = vmatprep.mubr.msk.f32.mxu1 %vm2776_vm0, %v2775_v3 }
  0x43   : > { %2462 = vmatprep.subr.mxu0 %v2775_v3  ;;  %2460 = vmatmul.mubr.f32.vlgmr.msra.gmra.mxu1 %v2912_v22 }
  0x44   : > { %2463 = vmatpush3.msra.mxu0 %v2960_v37  ;;  %2473 = vmatprep.subr.mxu1 %v2775_v3  ;;  %v1763_v37 = vsub.f32 %v3201_v27, %v1762_v33 }
  0x45   : > { %2464 = vmatprep.subr.mxu0 %v2775_v3  ;;  %2474 = vmatpush3.msra.mxu1 %v2944_v34 }
  0x46   : > { %2465 = vmatpush3.msra.mxu0 %v2973_v40  ;;  %2475 = vmatprep.subr.mxu1 %v2775_v3 }
  0x47   : > { %2466 = vmatprep.subr.mxu0 %v2775_v3  ;;  %2476 = vmatpush3.msra.mxu1 %v2953_v36 }
  0x48   : > { %2467 = vmatpush3.msra.mxu0 %v2984_v43  ;;  %2477 = vmatprep.subr.mxu1 %v2775_v3 }
  0x49   : > { %2468 = vmatprep.subr.mxu0 %v2775_v3  ;;  %2478 = vmatpush3.msra.mxu1 %v2962_v38 }
  0x4a   : > { %2469 = vmatpush3.msra.mxu0 %v2996_v45  ;;  %2470 = vmatprep.mubr.msk.f32.mxu0 %vm2776_vm0, %v2775_v3 }
  0x4b   : > { %2479 = vmatprep.subr.mxu1 %v2775_v3  ;;  %2471 = vmatmul.mubr.f32.vlgmr.msra.gmra.mxu0 %v2920_v26 }
  0x4c   : > { %2480 = vmatpush3.msra.mxu1 %v2978_v41  ;;  %2481 = vmatprep.mubr.msk.f32.mxu1 %vm2776_vm0, %v2775_v3 }
  0x4d   : > { %2484 = vmatprep.subr.mxu0 %v2775_v3  ;;  %2482 = vmatmul.mubr.f32.vlgmr.msra.gmra.mxu1 %v2924_v28 }
  0x4e   : > { %2485 = vmatpush3.msra.mxu0 %v771_v42  ;;  %2495 = vmatprep.subr.mxu1 %v2775_v3 }
  0x4f   : > { %2486 = vmatprep.subr.mxu0 %v2775_v3  ;;  %2496 = vmatpush3.msra.mxu1 %v2944_v34  ;;  %v3224_v34 = vsub.f32 %v2243_v25, %v3206_v29 }
  0x50   : > { %2487 = vmatpush3.msra.mxu0 %v778_v44  ;;  %2497 = vmatprep.subr.mxu1 %v2775_v3 }
  0x51   : > { %2488 = vmatprep.subr.mxu0 %v2775_v3  ;;  %2498 = vmatpush3.msra.mxu1 %v2953_v36  ;;  %v1769_v36 = vand.u32 4294901760, %v3212_v32 }
  0x52   : > { %2489 = vmatpush3.msra.mxu0 %v785_v47  ;;  %2499 = vmatprep.subr.mxu1 %v2775_v3 }
  0x53   : > { %2490 = vmatprep.subr.mxu0 %v2775_v3  ;;  %2500 = vmatpush3.msra.mxu1 %v2962_v38  ;;  %v1776_v38 = vand.u32 4294901760, %v3224_v34  ;;  %v1770_v40 = vsub.f32 %v3212_v32, %v1769_v36 }
  0x54   : > { %2491 = vmatpush3.msra.mxu0 %v792_v49  ;;  %2492 = vmatprep.mubr.msk.f32.mxu0 %vm2776_vm0, %v2775_v3 }
  0x55   : > { %2501 = vmatprep.subr.mxu1 %v2775_v3  ;;  %2493 = vmatmul.mubr.f32.vlgmr.msra.gmra.mxu0 %v2912_v22  ;;  %v1777_v42 = vsub.f32 %v3224_v34, %v1776_v38  ;;  %v1771_v43 = vand.u32 4294901760, %v1770_v40 }
  0x56   : > { %2502 = vmatpush3.msra.mxu1 %v2978_v41  ;;  %2503 = vmatprep.mubr.msk.f32.mxu1 %vm2776_vm0, %v2775_v3  ;;  %v1764_v41 = vand.u32 4294901760, %v1763_v37 }
  0x57   : > { %2506 = vmatprep.subr.mxu0 %v2775_v3  ;;  %2504 = vmatmul.mubr.f32.vlgmr.msra.gmra.mxu1 %v2912_v22  ;;  %v1778_v44 = vand.u32 4294901760, %v1777_v42 }
  0x58   : > { %2507 = vmatpush3.msra.mxu0 %v3058_v58  ;;  %2517 = vmatprep.subr.mxu1 %v2775_v3 }
  0x59   : > { %2508 = vmatprep.subr.mxu0 %v2775_v3  ;;  %2518 = vmatpush3.msra.mxu1 %v1265_v11 }
  0x5a   : > { %2509 = vmatpush3.msra.mxu0 %v3067_v60  ;;  %2519 = vmatprep.subr.mxu1 %v2775_v3 }
  0x5b   : > { %2510 = vmatprep.subr.mxu0 %v2775_v3  ;;  %2520 = vmatpush3.msra.mxu1 %v1272_v13 }
  0x5c   : > { %2511 = vmatpush3.msra.mxu0 %v3076_v62  ;;  %2521 = vmatprep.subr.mxu1 %v2775_v3 }
  0x5d   : > { %2512 = vmatprep.subr.mxu0 %v2775_v3  ;;  %2522 = vmatpush3.msra.mxu1 %v1279_v15 }
  0x5e   : > { %2513 = vmatpush3.msra.mxu0 %v3092_v1  ;;  %2514 = vmatprep.mubr.msk.f32.mxu0 %vm2776_vm0, %v2775_v3 }
  0x5f   : > { %2523 = vmatprep.subr.mxu1 %v2775_v3  ;;  %2515 = vmatmul.mubr.f32.vlgmr.msra.gmra.mxu0 %v2930_v31 }
  0x60   : > { %2524 = vmatpush3.msra.mxu1 %v1286_v16  ;;  %2525 = vmatprep.mubr.msk.f32.mxu1 %vm2776_vm0, %v2775_v3 }
  0x61   : > { %2528 = vmatprep.subr.mxu0 %v2775_v3  ;;  %2526 = vmatmul.mubr.f32.vlgmr.msra.gmra.mxu1 %v2912_v22 }
  0x62   : > { %2529 = vmatpush3.msra.mxu0 %v3074_v61  ;;  %2539 = vmatprep.subr.mxu1 %v2775_v3 }
  0x63   : > { %2530 = vmatprep.subr.mxu0 %v2775_v3  ;;  %2540 = vmatpush3.msra.mxu1 %v3058_v58 }
  0x64   : > { %2531 = vmatpush3.msra.mxu0 %v3087_v0  ;;  %2541 = vmatprep.subr.mxu1 %v2775_v3 }
  0x65   : > { %2532 = vmatprep.subr.mxu0 %v2775_v3  ;;  %2542 = vmatpush3.msra.mxu1 %v3067_v60 }
  0x66   : > { %2533 = vmatpush3.msra.mxu0 %v3098_v4  ;;  %2543 = vmatprep.subr.mxu1 %v2775_v3 }
  0x67   : > { %2534 = vmatprep.subr.mxu0 %v2775_v3  ;;  %2544 = vmatpush3.msra.mxu1 %v3076_v62 }
  0x68   : > { %2535 = vmatpush3.msra.mxu0 %v3110_v6  ;;  %2536 = vmatprep.mubr.msk.f32.mxu0 %vm2776_vm0, %v2775_v3 }
  0x69   : > { %2545 = vmatprep.subr.mxu1 %v2775_v3  ;;  %2537 = vmatmul.mubr.f32.vlgmr.msra.gmra.mxu0 %v2920_v26 }
  0x6a   : > { %2546 = vmatpush3.msra.mxu1 %v3092_v1  ;;  %2547 = vmatprep.mubr.msk.f32.mxu1 %vm2776_vm0, %v2775_v3 }
  0x6b   : > { %2550 = vmatprep.subr.mxu0 %v2775_v3  ;;  %2548 = vmatmul.mubr.f32.vlgmr.msra.gmra.mxu1 %v2924_v28 }
  0x6c   : > { %2551 = vmatpush3.msra.mxu0 %v1263_v2  ;;  %2561 = vmatprep.subr.mxu1 %v2775_v3 }
  0x6d   : > { %2552 = vmatprep.subr.mxu0 %v2775_v3  ;;  %2562 = vmatpush3.msra.mxu1 %v3058_v58 }
  0x6e   : > { %2553 = vmatpush3.msra.mxu0 %v1270_v5  ;;  %2563 = vmatprep.subr.mxu1 %v2775_v3 }
  0x6f   : > { %2554 = vmatprep.subr.mxu0 %v2775_v3  ;;  %2564 = vmatpush3.msra.mxu1 %v3067_v60 }
  0x70   : > { %2555 = vmatpush3.msra.mxu0 %v1277_v8  ;;  %2565 = vmatprep.subr.mxu1 %v2775_v3 }
  0x71   : > { %2556 = vmatprep.subr.mxu0 %v2775_v3  ;;  %2566 = vmatpush3.msra.mxu1 %v3076_v62 }
  0x72   : > { %2557 = vmatpush3.msra.mxu0 %v1284_v10  ;;  %2558 = vmatprep.mubr.msk.f32.mxu0 %vm2776_vm0, %v2775_v3 }
  0x73   : > { %2567 = vmatprep.subr.mxu1 %v2775_v3  ;;  %2559 = vmatmul.mubr.f32.vlgmr.msra.gmra.mxu0 %v2912_v22 }
  0x74   : > { %2568 = vmatpush3.msra.mxu1 %v3092_v1  ;;  %2569 = vmatprep.mubr.msk.f32.mxu1 %vm2776_vm0, %v2775_v3 }
  0x75   : > { %2572 = vmatprep.subr.mxu0 %v2775_v3  ;;  %2570 = vmatmul.mubr.f32.vlgmr.msra.gmra.mxu1 %v2912_v22 }
  0x76   : > { %2573 = vmatpush3.msra.mxu0 %v3172_v19  ;;  %2583 = vmatprep.subr.mxu1 %v2775_v3 }
  0x77   : > { %2574 = vmatprep.subr.mxu0 %v2775_v3  ;;  %2584 = vmatpush3.msra.mxu1 %v1757_v39 }
  0x78   : > { %2575 = vmatpush3.msra.mxu0 %v3181_v21  ;;  %2585 = vmatprep.subr.mxu1 %v2775_v3 }
  0x79   : > { %2576 = vmatprep.subr.mxu0 %v2775_v3  ;;  %2586 = vmatpush3.msra.mxu1 %v1764_v41 }
  0x7a   : > { %2577 = vmatpush3.msra.mxu0 %v3190_v24  ;;  %2587 = vmatprep.subr.mxu1 %v2775_v3 }
  0x7b   : > { %2578 = vmatprep.subr.mxu0 %v2775_v3  ;;  %2588 = vmatpush3.msra.mxu1 %v1771_v43 }
  0x7c   : > { %2579 = vmatpush3.msra.mxu0 %v3206_v29  ;;  %2580 = vmatprep.mubr.msk.f32.mxu0 %vm2776_vm0, %v2775_v3 }
  0x7d   : > { %2589 = vmatprep.subr.mxu1 %v2775_v3  ;;  %2581 = vmatmul.mubr.f32.vlgmr.msra.gmra.mxu0 %v2930_v31 }
  0x7e   : > { %2590 = vmatpush3.msra.mxu1 %v1778_v44  ;;  %2591 = vmatprep.mubr.msk.f32.mxu1 %vm2776_vm0, %v2775_v3 }
  0x7f   : > { %2594 = vmatprep.subr.mxu0 %v2775_v3  ;;  %2592 = vmatmul.mubr.f32.vlgmr.msra.gmra.mxu1 %v2912_v22 }
  0x80   : > { %2595 = vmatpush3.msra.mxu0 %v3188_v23  ;;  %2605 = vmatprep.subr.mxu1 %v2775_v3 }
  0x81   : > { %2596 = vmatprep.subr.mxu0 %v2775_v3  ;;  %2606 = vmatpush3.msra.mxu1 %v3172_v19 }
  0x82   : > { %2597 = vmatpush3.msra.mxu0 %v3201_v27  ;;  %2607 = vmatprep.subr.mxu1 %v2775_v3 }
  0x83   : > { %2598 = vmatprep.subr.mxu0 %v2775_v3  ;;  %2608 = vmatpush3.msra.mxu1 %v3181_v21 }
  0x84   : > { %2599 = vmatpush3.msra.mxu0 %v3212_v32  ;;  %2609 = vmatprep.subr.mxu1 %v2775_v3 }
  0x85   : > { %2600 = vmatprep.subr.mxu0 %v2775_v3  ;;  %2610 = vmatpush3.msra.mxu1 %v3190_v24 }
  0x86   : > { %2601 = vmatpush3.msra.mxu0 %v3224_v34  ;;  %2602 = vmatprep.mubr.msk.f32.mxu0 %vm2776_vm0, %v2775_v3 }
  0x87   : > { %2611 = vmatprep.subr.mxu1 %v2775_v3  ;;  %2603 = vmatmul.mubr.f32.vlgmr.msra.gmra.mxu0 %v2920_v26 }
  0x88   : > { %2612 = vmatpush3.msra.mxu1 %v3206_v29  ;;  %2613 = vmatprep.mubr.msk.f32.mxu1 %vm2776_vm0, %v2775_v3 }
  0x89   : > { %2616 = vmatprep.subr.mxu0 %v2775_v3  ;;  %2614 = vmatmul.mubr.f32.vlgmr.msra.gmra.mxu1 %v2924_v28 }
  0x8a   : > { %2617 = vmatpush3.msra.mxu0 %v1755_v30  ;;  %2627 = vmatprep.subr.mxu1 %v2775_v3 }
  0x8b   : > { %2618 = vmatprep.subr.mxu0 %v2775_v3  ;;  %2628 = vmatpush3.msra.mxu1 %v3172_v19 }
  0x8c   : > { %2619 = vmatpush3.msra.mxu0 %v1762_v33  ;;  %2629 = vmatprep.subr.mxu1 %v2775_v3 }
  0x8d   : > { %2620 = vmatprep.subr.mxu0 %v2775_v3  ;;  %2630 = vmatpush3.msra.mxu1 %v3181_v21 }
  0x8e   : > { %2621 = vmatpush3.msra.mxu0 %v1769_v36  ;;  %2631 = vmatprep.subr.mxu1 %v2775_v3 }
  0x8f   : > { %2622 = vmatprep.subr.mxu0 %v2775_v3  ;;  %2632 = vmatpush3.msra.mxu1 %v3190_v24 }
  0x90   : > { %2623 = vmatpush3.msra.mxu0 %v1776_v38  ;;  %2624 = vmatprep.mubr.msk.f32.mxu0 %vm2776_vm0, %v2775_v3 }
  0x91   : > { %2633 = vmatprep.subr.mxu1 %v2775_v3  ;;  %2625 = vmatmul.mubr.f32.vlgmr.msra.gmra.mxu0 %v2912_v22 }
  0x92   : > { %2634 = vmatpush3.msra.mxu1 %v3206_v29  ;;  %2635 = vmatprep.mubr.msk.f32.mxu1 %vm2776_vm0, %v2775_v3 }
  0x93   : > { %2636 = vmatmul.mubr.f32.vlgmr.msra.gmra.mxu1 %v2912_v22 }
  0xe4   : > { %v248_v26 = vpop.f32.mrf.mxu0 }
  0xe6   : > { %v339_v28 = vpop.f32.mrf.mxu1  ;;  %v2384_v31 = vpop.f32.mrf.mxu0 }
  0xe7   : > { %v340_v49 = vadd.f32 %v339_v28, %v248_v26 }
  0xe8   : > { %v2395_v45 = vpop.f32.mrf.mxu1 }
  0xed   : > { %v419_v46 = vpop.f32.mrf.mxu0 }
  0xee   : > { %v420_v51 = vadd.f32 %v419_v46, %v340_v49 }
  0xef   : > { %v496_v47 = vpop.f32.mrf.mxu1  ;;  %v2406_v48 = vpop.f32.mrf.mxu0 }
  0xf0   : > { %v497_v52 = vadd.f32 %v496_v47, %v420_v51 }
  0xf1   : > { %v2417_v50 = vpop.f32.mrf.mxu1 }
  0xf7   : > { %v579_v53 = vpop.f32.mrf.mxu0 }
  0xf8   : > { %v580_v54 = vadd.f32 %v579_v53, %v497_v52 }
  0xf9   : > { %v654_v55 = vpop.f32.mrf.mxu1  ;;  %v2428_v3 = vpop.f32.mrf.mxu0 }
  0xfa   : > { %v655_v22 = vadd.f32 %v654_v55, %v580_v54 }
  0xfb   : > { %v2439_v56 = vpop.f32.mrf.mxu1 }
  0xfc   : > { %659 = vst.msk [vmem:[%s3326_s26] sm:$0xff] %vm658_vm2, %v655_v22 }
 0x101   : > { %v740_v57 = vpop.f32.mrf.mxu0 }
 0x103   : > { %v831_v58 = vpop.f32.mrf.mxu1  ;;  %v2450_v59 = vpop.f32.mrf.mxu0 }
 0x104   : > { %v832_v0 = vadd.f32 %v831_v58, %v740_v57 }
 0x105   : > { %v2461_v60 = vpop.f32.mrf.mxu1 }
 0x10b   : > { %v911_v61 = vpop.f32.mrf.mxu0 }
 0x10c   : > { %v912_v2 = vadd.f32 %v911_v61, %v832_v0 }
 0x10d   : > { %v988_v62 = vpop.f32.mrf.mxu1  ;;  %v2472_v63 = vpop.f32.mrf.mxu0 }
 0x10e   : > { %v989_v4 = vadd.f32 %v988_v62, %v912_v2 }
 0x10f   : > { %v2483_v1 = vpop.f32.mrf.mxu1 }
 0x115   : > { %v1071_v5 = vpop.f32.mrf.mxu0 }
 0x116   : > { %v1072_v6 = vadd.f32 %v1071_v5, %v989_v4 }
 0x117   : > { %v1146_v7 = vpop.f32.mrf.mxu1  ;;  %v2494_v8 = vpop.f32.mrf.mxu0 }
 0x118   : > { %v1147_v9 = vadd.f32 %v1146_v7, %v1072_v6 }
 0x119   : > { %v2505_v10 = vpop.f32.mrf.mxu1 }
 0x11a   : > { %2237 = vst.msk [vmem:[%s3326_s26 + $0x8] sm:$0xff] %vm658_vm2, %v1147_v9 }
 0x11f   : > { %v1232_v11 = vpop.f32.mrf.mxu0 }
 0x121   : > { %v1323_v12 = vpop.f32.mrf.mxu1  ;;  %v2516_v13 = vpop.f32.mrf.mxu0 }
 0x122   : > { %v1324_v18 = vadd.f32 %v1323_v12, %v1232_v11 }
 0x123   : > { %v2527_v14 = vpop.f32.mrf.mxu1 }
 0x129   : > { %v1403_v15 = vpop.f32.mrf.mxu0 }
 0x12a   : > { %v1404_v20 = vadd.f32 %v1403_v15, %v1324_v18 }
 0x12b   : > { %v1480_v16 = vpop.f32.mrf.mxu1  ;;  %v2538_v17 = vpop.f32.mrf.mxu0 }
 0x12c   : > { %v1481_v21 = vadd.f32 %v1480_v16, %v1404_v20 }
 0x12d   : > { %v2549_v19 = vpop.f32.mrf.mxu1 }
 0x133   : > { %v1563_v23 = vpop.f32.mrf.mxu0 }
 0x134   : > { %v1564_v24 = vadd.f32 %v1563_v23, %v1481_v21 }
 0x135   : > { %v1638_v25 = vpop.f32.mrf.mxu1  ;;  %v2560_v27 = vpop.f32.mrf.mxu0 }
 0x136   : > { %v1639_v29 = vadd.f32 %v1638_v25, %v1564_v24 }
 0x137   : > { %v2571_v30 = vpop.f32.mrf.mxu1 }
 0x138   : > { %2242 = vst.msk [vmem:[%s3326_s26 + $0x10] sm:$0xff] %vm658_vm2, %v1639_v29 }
 0x13d   : > { %v1724_v32 = vpop.f32.mrf.mxu0 }
 0x13f   : > { %v1815_v33 = vpop.f32.mrf.mxu1  ;;  %v2582_v34 = vpop.f32.mrf.mxu0 }
 0x140   : > { %v1816_v39 = vadd.f32 %v1815_v33, %v1724_v32 }
 0x141   : > { %v2593_v35 = vpop.f32.mrf.mxu1 }
 0x147   : > { %v1895_v36 = vpop.f32.mrf.mxu0 }
 0x148   : > { %v1896_v41 = vadd.f32 %v1895_v36, %v1816_v39 }
 0x149   : > { %v1972_v37 = vpop.f32.mrf.mxu1  ;;  %v2604_v38 = vpop.f32.mrf.mxu0 }
 0x14a   : > { %v1973_v42 = vadd.f32 %v1972_v37, %v1896_v41 }
 0x14b   : > { %v2615_v40 = vpop.f32.mrf.mxu1 }
 0x151   : > { %v2055_v43 = vpop.f32.mrf.mxu0 }
 0x152   : > { %v2056_v44 = vadd.f32 %v2055_v43, %v1973_v42 }
 0x153   : > { %v2130_v26 = vpop.f32.mrf.mxu1  ;;  %v2626_v28 = vpop.f32.mrf.mxu0 }
 0x154   : > { %v2131_v31 = vadd.f32 %v2130_v26, %v2056_v44 }
 0x155   : > { %v2637_v45 = vpop.f32.mrf.mxu1 }
 0x156   : > { %2247 = vst.msk [vmem:[%s3326_s26 + $0x18] sm:$0xff] %vm658_vm2, %v2131_v31 }
 0x157   : > { %2710 = shalt.err (!%p2707_p5)
}
 0x158   : > { %s2711_s8 = scalar_lea.hbm %s3341_s3, 512  ;;  %s2715_s18 = scalar_lea.hbm %s3394_s2, 4096 }
 0x159   : > { %p2712_p6 = scmp.ne.s32.totalorder %s3341_s3, %s2711_s8  ;;  %p2716_p10 = scmp.lt.s32.totalorder %s3341_s3, %s3394_s2 }
 0x15a   : > { %p2717_p11 = scmp.lt.s32.totalorder %s2715_s18, %s2711_s8 }
 0x15b   : > { %p2713_p7 = pnand %p2712_p6, %p2835_p4 }
 0x15c   : > { %p2718_p12 = por %p2717_p11, %p2716_p10 }
 0x15d   : > { %p2714_p9 = pneg %p2713_p7 }
 0x15f   : > { %p2719_p13 = pnand %p2718_p12, %p2714_p9 }
 0x161   : > { %2722 = shalt.err (!%p2719_p13)
}
 0x162   : > { %s2778_s24 = smov 128   ;;  %s2779_s25 = smov 8  }
 0x163   : > { %2638 = dma.vmem_to_hbm [thread:$0]  (%p2835_p4), %s3336_s27, 512, %s3341_s3, %s3347_s4, %s2778_s24, %s2778_s24, %s2779_s25  }
 0x164 PF: > { %p2644_p0 = scmp.ge.s32.totalorder %s2773_s14, 2  ;;  %s2166_s26 = sand.u32 1, %s2753_s9  }
 0x165   : > { %s2167_s28 = scalar_lea.sflag [#allocation3], %s2166_s26 }
 0x166   : > { %p2641_p1 = pnand %p2644_p0, %p2842_p8 }
 0x168   : > { %p2642_p2 = pneg %p2641_p1 }
 0x16a   : > { %2748 = dma.done.wait (%p2642_p2), %s2167_s28, 512  }
 0x16b   : > { %2750 = vsyncadd (%p2642_p2), %s2167_s28, 4294966784  ;;  %s15_s14 = sadd.s32 1, %s2773_s14   ;;  %s3397_s9 = smov %s2757_s10 }
 0x16c   : > { %p12_p3 = scmp.ge.s32.totalorder %s15_s14, 10   ;;  %s3398_s10 = smov %s2761_s11 }
 0x16d   : > { %s3399_s11 = smov %s2848_s22  ;;  %s3400_s12 = smov %s2769_s13 }
 0x16e   : > { %s3401_s13 = smov %s3403_s17  ;;  %14 = sbr.rel (!%p12_p3) target bundleno = 4 (0x4), region = 69 }
 0x173   :  { %2172 = vsyncpa [#allocation3], 1 }
 0x174   :  { %2174 = vsyncpa [#allocation3 + $0x1], 1 }

</bundles_post_ra>
